<compile_context>
chip_gen: v7x
topology: tpu7x:2x2x1
jax: 0.10.0
libtpu: 0.0.40
codegen_flags: <defaults>
</compile_context>

<pallas_src>
import jax
import jax.numpy as jnp
from jax import lax
from jax.experimental import pallas as pl
from jax.experimental.pallas import tpu as pltpu


def _make_multiacc_kernel(n_total: int, tile_n: int, tiles_per_split: int,
                          target_is_indices: bool):
    """Kernel factory; all arguments are compile-time constants."""

    def kernel(logits_ref, tgt_ref, out_ref, count_ref):
        split = pl.program_id(0)      # "parallel" axis: one slice per TensorCore on v7x
        i = pl.program_id(1)          # "arbitrary" streaming axis within the slice

        # Re-init the resident accumulator at the start of each core-slice.
        @pl.when(i == 0)
        def _init():
            count_ref[...] = jnp.zeros_like(count_ref)

        logits = logits_ref[...]                              # (tn, C) native dtype (no f32 upcast)
        tn, c = logits.shape
        col = lax.broadcasted_iota(jnp.int32, (tn, c), 1)

        # predicted = argmax(output, 1): first occurrence of the max (matches torch.max).
        pmax = jnp.max(logits, axis=1, keepdims=True)
        pred = jnp.min(jnp.where(logits == pmax, col, c), axis=1, keepdims=True)   # (tn,1) int32

        if target_is_indices:
            # Raw class ids; out-of-range ids never match pred in [0, C) — matches PyTorch.
            tid = tgt_ref[...].astype(jnp.int32)              # (tn, 1)
        else:
            # target = argmax(target, 1) for one-hot / score targets (first occurrence on ties).
            tgt = tgt_ref[...]
            tmax = jnp.max(tgt, axis=1, keepdims=True)
            tid = jnp.min(jnp.where(tgt == tmax, col, c), axis=1, keepdims=True)

        # Mask rows past the end of the batch (partial last tile / over-provisioned split tiles).
        tile_idx = split * tiles_per_split + i
        row = lax.broadcasted_iota(jnp.int32, (tn, 1), 0)
        valid = (tile_idx * tile_n + row) < n_total
        hit = jnp.logical_and(valid, pred == tid)

        # Per-tile count is exact in f32 (rows-per-tile << 2^24); running count is exact in int32.
        tile_hits = jnp.sum(hit.astype(jnp.float32)).astype(jnp.int32)
        count_ref[...] = count_ref[...] + tile_hits.reshape(1, 1)

        # Emit this core-slice's raw count on its last grid step (normalization is in the wrapper).
        @pl.when(i == pl.num_programs(1) - 1)
        def _finalize():
            out_ref[...] = jnp.broadcast_to(count_ref[...].reshape(1, 1, 1), out_ref.shape)

    return kernel


def _vmem_limit_bytes() -> int:
    """~75% of physical VMEM: ≈48 MiB on v7x (64 MiB phys), capped at 96 MiB on v5e/v6e."""
    cap = 128 << 20
    try:
        cap = int(pltpu.get_tpu_info().vmem_capacity_bytes)
    except Exception:
        pass
    return max(16 << 20, min((cap * 3) // 4, 96 << 20))


def _pick_tile_n(stream_bytes_per_row: int, temp_bytes_per_row: int, vmem_limit: int) -> int:
    """Batch tile: big enough (in bytes) to amortize per-step overhead, small enough for VMEM."""
    budget = max(vmem_limit - (8 << 20), 8 << 20)               # headroom: output/compiler scratch
    per_row = 2 * stream_bytes_per_row + temp_bytes_per_row     # 2x pipeline buffers + live temps
    tn_vmem = budget // max(per_row, 1)
    # Bytes-based target: >= ~4 MiB of streamed data per block so the ~0.35 us fixed per-grid-step
    # overhead stays negligible vs. the HBM DMA, regardless of C / dtype.
    tn_target = max((4 << 20) // max(stream_bytes_per_row, 1), 1024)
    return max(8, int(min(tn_vmem, tn_target)))


def multi_acc(output, target, *, tile_n=None, num_splits=2):
    """Pallas-backed equivalent of MultiAcc.forward(output, target)."""
    output = jnp.asarray(output)                  # keep native dtype (bf16/f16/f32)
    if output.ndim != 2:
        raise ValueError("output must be [N, C]")
    n, c = output.shape
    target = jnp.asarray(target)
    target_is_indices = target.ndim == 1

    vmem_limit = _vmem_limit_bytes()

    if target_is_indices:
        tgt = target.astype(jnp.int32).reshape(n, 1)
        stream = output.dtype.itemsize * c + 4               # logits row + one int32 id
    else:
        tgt = target
        stream = (output.dtype.itemsize + target.dtype.itemsize) * c
    temp = 8 * c                                              # one int32 iota + one int32 select live

    tn = int(tile_n) if tile_n is not None else _pick_tile_n(stream, temp, vmem_limit)
    tn = max(1, min(tn, n))
    # Round to the dtype's packed sublane count (bf16/f16 VMEM tiles are natively (16,128)).
    sub = {1: 32, 2: 16}.get(output.dtype.itemsize, 8)
    if tn < n:
        tn = max(sub, (tn // sub) * sub)
        if tn >= n:
            tn = n

    tiles_total = -(-n // tn)
    n_splits = num_splits if tiles_total >= num_splits else 1
    # Auto-tile path: nudge the tile so the tile count splits evenly across cores (no wasted DMA).
    if tile_n is None and n_splits == 2 and tiles_total % 2 == 1:
        tn2 = -(-n // (tiles_total + 1))
        tn2 = max(sub, -(-tn2 // sub) * sub)
        if tn2 < n and (-(-n // tn2)) % 2 == 0:
            tn = tn2
            tiles_total = -(-n // tn)
    tiles_per_split = -(-tiles_total // n_splits)
    grid = (n_splits, tiles_per_split)

    def in_map(s, i):
        # Clamp the over-provisioned tail tile of a split in bounds (its rows are masked in-kernel).
        return (jnp.minimum(s * tiles_per_split + i, tiles_total - 1), 0)

    tgt_block = (tn, 1) if target_is_indices else (tn, c)
    kernel = _make_multiacc_kernel(n, tn, tiles_per_split, target_is_indices)

    counts = pl.pallas_call(
        kernel,
        out_shape=jax.ShapeDtypeStruct((n_splits, 8, 128), jnp.int32),
        grid_spec=pltpu.PrefetchScalarGridSpec(
            num_scalar_prefetch=0,
            grid=grid,
            in_specs=[
                pl.BlockSpec((tn, c), in_map),
                pl.BlockSpec(tgt_block, in_map),
            ],
            out_specs=pl.BlockSpec((1, 8, 128), lambda s, i: (s, 0, 0)),   # per-core count block
            scratch_shapes=[pltpu.VMEM((1, 1), jnp.int32)],
        ),
        compiler_params=pltpu.CompilerParams(
            dimension_semantics=("parallel", "arbitrary"),   # cores x streaming/accumulation axis
            vmem_limit_bytes=vmem_limit,
        ),
    )(output, tgt)

    total = counts[:, 0, 0].astype(jnp.float32).sum()
    return total / jnp.float32(n)


if __name__ == "__main__":
    key = jax.random.PRNGKey(0)
    k1, k2 = jax.random.split(key)

    N, C = 20, 32
    logits = jax.random.normal(k1, (N, C), dtype=jnp.float32)
    target_idx = jax.random.randint(k2, (N,), 0, C, dtype=jnp.int32)

    ref = jnp.mean((jnp.argmax(logits, axis=1) == target_idx).astype(jnp.float32))

    # Case 1: integer class-id targets, auto tile (single block, single split).
    acc1 = multi_acc(logits, target_idx)
    jax.block_until_ready(acc1)
    assert jnp.allclose(acc1, ref, atol=1e-6), (acc1, ref)

    # Case 2: forced small tile -> dual split, multi-block accumulation, clamped+masked tail tile.
    acc2 = multi_acc(logits, target_idx, tile_n=8)
    jax.block_until_ready(acc2)
    assert jnp.allclose(acc2, ref, atol=1e-6), (acc2, ref)

    # Case 3: one-hot (2-D) targets (target.dim() > 1 branch).
    target_onehot = jax.nn.one_hot(target_idx, C, dtype=jnp.float32)
    acc3 = multi_acc(logits, target_onehot, tile_n=8)
    jax.block_until_ready(acc3)
    assert jnp.allclose(acc3, ref, atol=1e-6), (acc3, ref)

    # Case 4: bf16 logits streamed and compared natively (no f32 upcast), 16-row sublane tiles.
    logits_bf16 = logits.astype(jnp.bfloat16)
    acc4 = multi_acc(logits_bf16, target_idx, tile_n=16)
    jax.block_until_ready(acc4)
    lb = logits_bf16.astype(jnp.float32)
    pmax = lb.max(axis=1, keepdims=True)
    pred_ref = jnp.min(jnp.where(lb == pmax, jnp.arange(C)[None, :], C), axis=1)
    ref_bf16 = jnp.mean((pred_ref == target_idx).astype(jnp.float32))
    assert jnp.allclose(acc4, ref_bf16, atol=1e-6), (acc4, ref_bf16)

    print("KERNEL_OK")
</pallas_src>

<mosaic_0001>
module attributes {stable_mosaic.version = 11 : i64} {
  func.func @kernel(%arg0: i32, %arg1: i32, %arg2: memref<20x32xf32, #tpu.memory_space<vmem>>, %arg3: memref<20x1xi32, #tpu.memory_space<vmem>>, %arg4: memref<1x8x128xi32, #tpu.memory_space<vmem>>, %arg5: memref<1x1xi32, #tpu.memory_space<vmem>>) attributes {dimension_semantics = [#tpu.dimension_semantics<parallel>, #tpu.dimension_semantics<arbitrary>], iteration_bounds = array<i64: 1, 1>, scalar_prefetch = 0 : i64, scratch_operands = 1 : i64, tpu.core_type = #tpu.core_type<tc>, window_params = [{transform_indices = @transform_0, window_bounds = array<i64: 20, 32>}, {transform_indices = @transform_1, window_bounds = array<i64: 20, 1>}, {transform_indices = @transform_2, window_bounds = array<i64: 1, 8, 128>}]} {
    %c0_i32 = arith.constant 0 : i32
    %0 = arith.cmpi eq, %arg1, %c0_i32 : i32
    %1 = arith.extui %0 : i1 to i32
    %c0_i32_0 = arith.constant 0 : i32
    %2 = arith.cmpi ne, %1, %c0_i32_0 : i32
    scf.if %2 {
      %c0_i32_13 = arith.constant 0 : i32
      %38 = vector.broadcast %c0_i32_13 : i32 to vector<1x1xi32>
      %c0_14 = arith.constant 0 : index
      %c0_15 = arith.constant 0 : index
      %39 = vector.load %arg5[%c0_14, %c0_15] : memref<1x1xi32, #tpu.memory_space<vmem>>, vector<1x1xi32>
      tpu.vector_store %arg5[%c0_14, %c0_15], %38 {strides = array<i32>} : memref<1x1xi32, #tpu.memory_space<vmem>>, vector<1x1xi32>,
    } else {
    }
    %c0 = arith.constant 0 : index
    %c0_1 = arith.constant 0 : index
    %3 = vector.load %arg2[%c0, %c0_1] : memref<20x32xf32, #tpu.memory_space<vmem>>, vector<20x32xf32>
    %4 = tpu.iota {dimensions = array<i32: 1>} : vector<20x32xi32>
    %cst = arith.constant dense<0xFF800000> : vector<20xf32>
    %5 = vector.multi_reduction <maximumf>, %3, %cst [1] : vector<20x32xf32> to vector<20xf32>
    %6 = vector.shape_cast %5 : vector<20xf32> to vector<20x1xf32>
    %7 = vector.broadcast %6 : vector<20x1xf32> to vector<20x32xf32>
    %8 = arith.cmpf oeq, %3, %7 : vector<20x32xf32>
    %c32_i32 = arith.constant 32 : i32
    %9 = vector.broadcast %c32_i32 : i32 to vector<20x32xi32>
    %10 = arith.select %8, %4, %9 : vector<20x32xi1>, vector<20x32xi32>
    %cst_2 = arith.constant dense<2147483647> : vector<20xi32>
    %11 = vector.multi_reduction <minsi>, %10, %cst_2 [1] : vector<20x32xi32> to vector<20xi32>
    %12 = vector.shape_cast %11 : vector<20xi32> to vector<20x1xi32>
    %c0_3 = arith.constant 0 : index
    %c0_4 = arith.constant 0 : index
    %13 = vector.load %arg3[%c0_3, %c0_4] : memref<20x1xi32, #tpu.memory_space<vmem>>, vector<20x1xi32>
    %c1_i32 = arith.constant 1 : i32
    %14 = arith.muli %arg0, %c1_i32 : i32
    %15 = arith.addi %14, %arg1 : i32
    %16 = tpu.iota {dimensions = array<i32: 0>} : vector<20x1xi32>
    %c20_i32 = arith.constant 20 : i32
    %17 = arith.muli %15, %c20_i32 : i32
    %18 = vector.broadcast %17 : i32 to vector<20x1xi32>
    %19 = arith.addi %18, %16 : vector<20x1xi32>
    %c20_i32_5 = arith.constant 20 : i32
    %20 = vector.broadcast %c20_i32_5 : i32 to vector<20x1xi32>
    %21 = arith.cmpi slt, %19, %20 : vector<20x1xi32>
    %22 = arith.cmpi eq, %12, %13 : vector<20x1xi32>
    %23 = arith.andi %21, %22 : vector<20x1xi1>
    %24 = arith.extui %23 : vector<20x1xi1> to vector<20x1xi32>
    %25 = arith.sitofp %24 : vector<20x1xi32> to vector<20x1xf32>
    %26 = vector.shape_cast %25 : vector<20x1xf32> to vector<1x20x1xf32>
    %cst_6 = arith.constant dense<0.000000e+00> : vector<1xf32>
    %27 = vector.multi_reduction <add>, %26, %cst_6 [1, 2] : vector<1x20x1xf32> to vector<1xf32>
    %28 = vector.shape_cast %27 : vector<1xf32> to vector<1x1x1xf32>
    %29 = vector.extract %28[0, 0, 0] : f32 from vector<1x1x1xf32>
    %30 = arith.fptosi %29 : f32 to i32
    %c0_7 = arith.constant 0 : index
    %c0_8 = arith.constant 0 : index
    %31 = vector.load %arg5[%c0_7, %c0_8] : memref<1x1xi32, #tpu.memory_space<vmem>>, vector<1x1xi32>
    %32 = vector.broadcast %30 : i32 to vector<1x1xi32>
    %33 = arith.addi %31, %32 : vector<1x1xi32>
    %c0_9 = arith.constant 0 : index
    %c0_10 = arith.constant 0 : index
    %34 = vector.load %arg5[%c0_9, %c0_10] : memref<1x1xi32, #tpu.memory_space<vmem>>, vector<1x1xi32>
    tpu.vector_store %arg5[%c0_9, %c0_10], %33 {strides = array<i32>} : memref<1x1xi32, #tpu.memory_space<vmem>>, vector<1x1xi32>,
    %c0_i32_11 = arith.constant 0 : i32
    %35 = arith.cmpi eq, %arg1, %c0_i32_11 : i32
    %36 = arith.extui %35 : i1 to i32
    %c0_i32_12 = arith.constant 0 : i32
    %37 = arith.cmpi ne, %36, %c0_i32_12 : i32
    scf.if %37 {
      %c0_13 = arith.constant 0 : index
      %c0_14 = arith.constant 0 : index
      %38 = vector.load %arg5[%c0_13, %c0_14] : memref<1x1xi32, #tpu.memory_space<vmem>>, vector<1x1xi32>
      %39 = vector.shape_cast %38 : vector<1x1xi32> to vector<1x1x1xi32>
      %40 = vector.shape_cast %39 : vector<1x1x1xi32> to vector<1x1x1xi32>
      %41 = vector.broadcast %40 : vector<1x1x1xi32> to vector<1x8x128xi32>
      %c0_15 = arith.constant 0 : index
      %c0_16 = arith.constant 0 : index
      %c0_17 = arith.constant 0 : index
      %42 = vector.load %arg4[%c0_15, %c0_16, %c0_17] : memref<1x8x128xi32, #tpu.memory_space<vmem>>, vector<1x8x128xi32>
      tpu.vector_store %arg4[%c0_15, %c0_16, %c0_17], %41 {strides = array<i32>} : memref<1x8x128xi32, #tpu.memory_space<vmem>>, vector<1x8x128xi32>,
    } else {
    }
    return
  }
  func.func @transform_0(%arg0: i32, %arg1: i32) -> (i32, i32) {
    %c1_i32 = arith.constant 1 : i32
    %0 = arith.muli %arg0, %c1_i32 : i32
    %1 = arith.addi %0, %arg1 : i32
    %c0_i32 = arith.constant 0 : i32
    %2 = arith.minsi %1, %c0_i32 : i32
    %c0_i32_0 = arith.constant 0 : i32
    %c0_i32_1 = arith.constant 0 : i32
    return %2, %c0_i32_0 : i32, i32
  }
  func.func @transform_1(%arg0: i32, %arg1: i32) -> (i32, i32) {
    %c1_i32 = arith.constant 1 : i32
    %0 = arith.muli %arg0, %c1_i32 : i32
    %1 = arith.addi %0, %arg1 : i32
    %c0_i32 = arith.constant 0 : i32
    %2 = arith.minsi %1, %c0_i32 : i32
    %c0_i32_0 = arith.constant 0 : i32
    %c0_i32_1 = arith.constant 0 : i32
    return %2, %c0_i32_0 : i32, i32
  }
  func.func @transform_2(%arg0: i32, %arg1: i32) -> (i32, i32, i32) {
    %c0_i32 = arith.constant 0 : i32
    %c0_i32_0 = arith.constant 0 : i32
    %c0_i32_1 = arith.constant 0 : i32
    return %arg0, %c0_i32, %c0_i32_0 : i32, i32, i32
  }
}

</mosaic_0001>

<bundles_post_ra>
// kernel: tpu_custom_call.1
= control target key start
LH: loop header
LB: loop body
LE: loop exit
PB: predicated region body
PF: predicated region fallthrough
CT: control target
= control target key end

     0   :  { %7 = vsyncpa [#allocation4], 0  ;;  %s372_s0 = inlined_call_operand.hbm [shape: f32[20,32], index: 0, kind: input, shape index: {}]   ;;  %s373_s1 = inlined_call_operand.hbm [shape: s32[20,1], index: 1, kind: input, shape index: {}]   ;;  %s374_s2 = inlined_call_operand.hbm [shape: s32[1,8,128], index: 2, kind: output, shape index: {}]  }
   0x1   :  { %8 = vsyncpa [#allocation7], 0 }
   0x2   :  { %9 = vsyncpa [#allocation5], 0  ;;  %s306_s9 = smov [#allocation3]   ;;  %s234_s13 = scalar_lea.hbm %s372_s0, 384 }
   0x3   :  { %s21_s10 = sshll.u32 %s306_s9, 4  ;;  %p235_p0 = scmp.ne.s32.totalorder %s372_s0, %s234_s13  ;;  %s22_s10 = int_to_ptr.vmem [resolvable:$true] %s21_s10 }
   0x4   :  { %p238_p1 = scmp.lt.u32.totalorder %s234_s13, %s372_s0 }
   0x6   :  { %p240_p2 = pnand %p238_p1, %p235_p0 }
   0x8   :  { %243 = shalt.err (!%p240_p2)
}
   0x9   :  { %s244_s18 = scalar_lea.vmem %s22_s10, 384  ;;  %p249_p4 = scmp.lt.s32.totalorder %s22_s10, %s22_s10 }
   0xa   :  { %p245_p3 = scmp.ne.s32.totalorder %s22_s10, %s244_s18  ;;  %p250_p5 = scmp.lt.s32.totalorder %s244_s18, %s244_s18 }
   0xc   :  { %p251_p6 = por %p250_p5, %p249_p4 }
   0xe   :  { %p252_p7 = pnand %p251_p6, %p245_p3 }
  0x10   :  { %255 = shalt.err (!%p252_p7)
}
  0x11   :  { %s307_s19 = smov 128   ;;  %s308_s20 = smov 8  }
  0x12   :  { %27 = dma.hbm_to_vmem [thread:$0]  %s372_s0, 384, %s22_s10, [#allocation4], %s307_s19, %s307_s19, %s308_s20  }
  0x13   :  { %s309_s23 = smov [#allocation6]   ;;  %s256_s27 = scalar_lea.hbm %s373_s1, 384 }
  0x14   :  { %s39_s24 = sshll.u32 %s309_s23, 4  ;;  %p257_p8 = scmp.ne.s32.totalorder %s373_s1, %s256_s27  ;;  %s40_s24 = int_to_ptr.vmem [resolvable:$true] %s39_s24 }
  0x15   :  { %p260_p9 = scmp.lt.u32.totalorder %s256_s27, %s373_s1 }
  0x17   :  { %p262_p10 = pnand %p260_p9, %p257_p8 }
  0x19   :  { %265 = shalt.err (!%p262_p10)
}
  0x1a   :  { %s266_s4 = scalar_lea.vmem %s40_s24, 384  ;;  %p271_p12 = scmp.lt.s32.totalorder %s40_s24, %s40_s24 }
  0x1b   :  { %p267_p11 = scmp.ne.s32.totalorder %s40_s24, %s266_s4  ;;  %p272_p13 = scmp.lt.s32.totalorder %s266_s4, %s266_s4 }
  0x1d   :  { %p273_p0 = por %p272_p13, %p271_p12 }
  0x1f   :  { %p274_p1 = pnand %p273_p0, %p267_p11 }
  0x21   :  { %277 = shalt.err (!%p274_p1)
}
  0x22   :  { %45 = dma.hbm_to_vmem [thread:$0]  %s373_s1, 384, %s40_s24, [#allocation7], %s307_s19, %s307_s19, %s308_s20  }
  0x23   :  { %300 = dma.done.wait [#allocation4], 384  }
  0x24   :  { %301 = vsyncadd [#allocation4], 4294966912 }
  0x25   :  { %302 = dma.done.wait [#allocation7], 384  }
  0x26   :  { %303 = vsyncadd [#allocation7], 4294966912  ;;  %vm71_vm0 = vcmask 261120   ;;  %vm78_vm1 = vcmask 257024   ;;  %v66_v0 = vld [vmem:[#allocation3] sm:$0xff]  ;;  %v67_v2 = vld [vmem:[#allocation3 + $0x8] sm:$0xff]  ;;  %v69_v6 = vlaneseq }
  0x27   :  { %v68_v1 = vld [vmem:[#allocation3 + $0x10] sm:$0xf]  ;;  %v72_v3 = vsel %vm71_vm0, %v66_v0, -inf  ;;  %v75_v5 = vsel %vm71_vm0, %v67_v2, -inf  ;;  %v133_v42 = vld [vmem:[#allocation6] sm:$0xff]  ;;  %v134_v52 = vld [vmem:[#allocation6 + $0x8] sm:$0xff] }
  0x28   :  { %v79_v4 = vsel %vm78_vm1, %v68_v1, -inf  ;;  %73 = vmax.xlane.f32.xlu0 %v72_v3  ;;  %v70_v7 = vand.u32 127, %v69_v6  ;;  %v138_v36 = vshrl.u32 %v69_v6, 7  ;;  %v135_v51 = vld [vmem:[#allocation6 + $0x10] sm:$0xf]  ;;  %v310_v55 = vmov 0.0  }
  0x29   :  { %80 = vmax.xlane.f32.xlu1 %v79_v4  ;;  %vm161_vm10 = vcmask 7168   ;;  %vm165_vm13 = vcmask 3072   ;;  %vm64_vm15 = vcmask 0   ;;  %s312_s9 = smov [#allocation8]  }
  0x2a   :  { %v140_v44 = vadd.s32 16, %v138_v36  ;;  %s201_s10 = sshll.u32 %s312_s9, 4  ;;  %s202_s10 = int_to_ptr.vmem [resolvable:$true] %s201_s10 }
  0x2b   :  { %s278_s11 = scalar_lea.vmem %s202_s10, 128  ;;  %p283_p4 = scmp.lt.s32.totalorder %s202_s10, %s202_s10 }
  0x2c   :  { %76 = vmax.xlane.f32.xlu0 %v75_v5  ;;  %vm148_vm9 = vcmp.lt.s32.totalorder %v140_v44, 20  ;;  %p279_p3 = scmp.ne.s32.totalorder %s202_s10, %s278_s11  ;;  %p284_p5 = scmp.lt.s32.totalorder %s278_s11, %s278_s11 }
  0x2e   :  { %p285_p6 = por %p284_p5, %p283_p4 }
  0x30   :  { %p286_p7 = pnand %p285_p6, %p279_p3 }
  0xb5   :  { %v74_v8 = vpop.xlane.xlu0 %73 }
  0xb6   :  { %v81_v9 = vpop.xlane.xlu1 %80  ;;  %vm82_vm2 = vcmp.eq.f32.partialorder %v66_v0, %v74_v8  ;;  %v311_v0 = vmov 0  }
  0xb7   :  { %vm84_vm3 = vcmp.eq.f32.partialorder %v68_v1, %v81_v9  ;;  %v85_v10 = vsel %vm82_vm2, %v70_v7, 32  ;;  %233 = vset.pattern.permute.xlu0 %v311_v0  ;;  %65 = vst.msk [vmem:[#allocation2] sm:$0x1] %vm64_vm15, %v311_v0 }
  0xb8   :  { %v87_v11 = vsel %vm84_vm3, %v70_v7, 32  ;;  %v88_v12 = vsel %vm71_vm0, %v85_v10, 2147483647 }
  0xb9   :  { %v118_v13 = vsel %vm78_vm1, %v87_v11, 2147483647  ;;  %v77_v14 = vpop.xlane.xlu0 %76  ;;  %v90_v15 = vshra.s32 %v88_v12, 16  ;;  %v89_v23 = vand.u32 65535, %v88_v12 }
  0xba   :  { %v120_v16 = vshra.s32 %v118_v13, 16  ;;  %vm83_vm4 = vcmp.eq.f32.partialorder %v67_v2, %v77_v14  ;;  %v119_v26 = vand.u32 65535, %v118_v13 }
  0xbb   :  { %v86_v17 = vsel %vm83_vm4, %v70_v7, 32  ;;  %v92_v18 = vcvt.s32.f32 %v90_v15  ;;  %v91_v25 = vcvt.s32.f32 %v89_v23 }
  0xbc   :  { %v103_v19 = vsel %vm71_vm0, %v86_v17, 2147483647  ;;  %v122_v20 = vcvt.s32.f32 %v120_v16  ;;  %v121_v31 = vcvt.s32.f32 %v119_v26 }
  0xbd   :  { %93 = vmin.xlane.f32.xlu1 %v92_v18  ;;  %v105_v21 = vshra.s32 %v103_v19, 16  ;;  %v104_v27 = vand.u32 65535, %v103_v19 }
  0xbe   :  { %v178_v8 = vld [vmem:[#allocation2] sm:$0x1] }
  0xbf   :  { %v107_v22 = vcvt.s32.f32 %v105_v21  ;;  %v106_v32 = vcvt.s32.f32 %v104_v27 }
  0xc1   :  { %123 = vmin.xlane.f32.xlu1 %v122_v20  ;;  %108 = vmin.xlane.f32.xlu0 %v107_v22 }
 0x14a   :  { %v94_v24 = vpop.xlane.xlu1 %93 }
 0x14b   :  { %vm95_vm5 = vcmp.eq.f32.partialorder %v92_v18, %v94_v24  ;;  %v100_v35 = vcvt.f32.s32 %v94_v24 }
 0x14c   :  { %v96_v28 = vsel %vm95_vm5, %v91_v25, inf }
 0x14d   :  { %97 = vmin.xlane.f32.xlu0 %v96_v28  ;;  %v101_v40 = vshll.u32 %v100_v35, 16 }
 0x14e   :  { %v124_v29 = vpop.xlane.xlu1 %123  ;;  %v109_v30 = vpop.xlane.xlu0 %108 }
 0x14f   :  { %vm125_vm6 = vcmp.eq.f32.partialorder %v122_v20, %v124_v29  ;;  %vm110_vm7 = vcmp.eq.f32.partialorder %v107_v22, %v109_v30  ;;  %v130_v37 = vcvt.f32.s32 %v124_v29  ;;  %v115_v38 = vcvt.f32.s32 %v109_v30 }
 0x150   :  { %v126_v33 = vsel %vm125_vm6, %v121_v31, inf  ;;  %v111_v34 = vsel %vm110_vm7, %v106_v32, inf }
 0x151   :  { %127 = vmin.xlane.f32.xlu0 %v126_v33  ;;  %112 = vmin.xlane.f32.xlu1 %v111_v34  ;;  %v131_v45 = vshll.u32 %v130_v37, 16  ;;  %v116_v46 = vshll.u32 %v115_v38, 16 }
 0x1da   :  { %v98_v39 = vpop.xlane.xlu0 %97 }
 0x1db   :  { %v99_v41 = vcvt.f32.s32 %v98_v39 }
 0x1dd   :  { %v102_v43 = vadd.s32 %v101_v40, %v99_v41 }
 0x1de   :  { %v128_v47 = vpop.xlane.xlu0 %127  ;;  %v113_v48 = vpop.xlane.xlu1 %112 }
 0x1df   :  { %vm149_vm8 = vcmp.eq.s32.totalorder %v102_v43, %v133_v42  ;;  %v129_v49 = vcvt.f32.s32 %v128_v47  ;;  %v114_v50 = vcvt.f32.s32 %v113_v48 }
 0x1e0   :  { %v215_v56 = vsel %vm149_vm8, 1.0, %v310_v55 }
 0x1e1   :  { %v132_v53 = vadd.s32 %v131_v45, %v129_v49  ;;  %v117_v54 = vadd.s32 %v116_v46, %v114_v50  ;;  %v162_v59 = vsel %vm161_vm10, %v215_v56, 0.0 }
 0x1e3   :  { %vm151_vm11 = vcmp.eq.s32.totalorder %v132_v53, %v135_v51  ;;  %vm150_vm12 = vcmp.eq.s32.totalorder %v117_v54, %v134_v52 }
 0x1e4   :  { %vm154_vm14 = vmand %vm148_vm9, %vm151_vm11  ;;  %v216_v57 = vsel %vm150_vm12, 1.0, %v310_v55 }
 0x1e5   :  { %v217_v58 = vsel %vm154_vm14, 1.0, %v310_v55  ;;  %v163_v60 = vsel %vm161_vm10, %v216_v57, 0.0 }
 0x1e6   :  { %v164_v61 = vadd.f32 %v163_v60, %v162_v59  ;;  %v166_v62 = vsel %vm165_vm13, %v217_v58, 0.0 }
 0x1e8   :  { %v167_v63 = vadd.f32 %v166_v62, %v164_v61 }
 0x1ea   :  { %168 = vadd.xlane.f32.xlu1 %v167_v63 }
 0x277   :  { %v169_v1 = vpop.xlane.xlu1 %168 }
 0x278   :  { %v170_v2 = vrot.slane %v169_v1, 4 }
 0x27a   :  { %v171_v3 = vadd.f32 %v170_v2, %v169_v1 }
 0x27c   :  { %v172_v4 = vrot.slane %v171_v3, 2 }
 0x27e   :  { %v173_v5 = vadd.f32 %v172_v4, %v171_v3 }
 0x280   :  { %v174_v6 = vrot.slane %v173_v5, 1 }
 0x282   :  { %v175_v7 = vadd.f32 %v174_v6, %v173_v5 }
 0x284   :  { %219 = vpush %v175_v7 }
 0x2b5   :  { %s220_s1 = spop %219 }
 0x2b6   :  { %p221_p2 = scmp.lt.s32.totalorder %s220_s1, 0  ;;  %s222_s6 = sceil.f32 %s220_s1 }
 0x2b7   :  { %s223_s7 = sfloor.f32 %s220_s1 }
 0x2b8   :  { %s376_s6 = smov (!%p221_p2, %s222_s6), %s223_s7 }
 0x2b9   :  { %s225_s8 = scvt.f32.s32 %s376_s6 }
 0x2bb   :  { %v179_v9 = vstv %s225_s8 }
 0x2bc   :  { %v180_v10 = vadd.s32 %v179_v9, %v178_v8 }
 0x2be   :  { %182 = vst.msk [vmem:[#allocation2] sm:$0x1] %vm64_vm15, %v180_v10 }
 0x2c5   :  { %v218_v11 = vld [vmem:[#allocation2] ss:$0 sm:$0xff] }
 0x2c6   :  { %192 = vperm.xlu0 %233, %v218_v11  }
 0x345   :  { %v193_v12 = vpop.permute.xlu0 %192 }
 0x346   :  { %194 = vst [vmem:[#allocation8] sm:$0xff] %v193_v12 }
 0x347   :  { %289 = shalt.err (!%p286_p7)
}
 0x348   :  { %s290_s14 = scalar_lea.hbm %s374_s2, 128 }
 0x349   :  { %p291_p8 = scmp.ne.s32.totalorder %s374_s2, %s290_s14  ;;  %p294_p9 = scmp.lt.u32.totalorder %s290_s14, %s374_s2 }
 0x34b   :  { %p296_p10 = pnand %p294_p9, %p291_p8 }
 0x34d   :  { %299 = shalt.err (!%p296_p10)
}
 0x34e   :  { %204 = dma.vmem_to_hbm [thread:$0]  %s202_s10, 128, %s374_s2, [#allocation5]  }
 0x34f   :  { %304 = dma.done.wait [#allocation5], 128  }
 0x350   :  { %305 = vsyncadd [#allocation5], 4294967168 }
 0x351   :  { %208 = vsyncpa [#allocation4], 1 }
 0x352   :  { %209 = vsyncpa [#allocation7], 1 }
 0x353   :  { %210 = vsyncpa [#allocation5], 1 }

</bundles_post_ra>
